<compile_context>
chip_gen: v7x
topology: tpu7x:2x2x1
jax: 0.10.0
libtpu: 0.0.40
codegen_flags: <defaults>
</compile_context>

<pallas_src>
import jax
import jax.numpy as jnp
from jax.experimental import pallas as pl
from jax.experimental.pallas import tpu as pltpu


LANE = 128       # hidden dim is zero-padded to the 128-lane width
MAX_TM = 2048    # batch tile cap; working set stays well under scoped-VMEM


def _round_up(x, m):
    return ((x + m - 1) // m) * m


# ----------------------------------------------------------------------------
# Pallas kernel: fused Linear -> ReLU -> Linear -> ReLU -> Linear on one
# (tm, state_dim) batch tile.  Matmuls accumulate in f32 on the MXU; the
# bias-add / ReLU epilogue stays in f32 (works on v5e's f32-only VPU).
# ----------------------------------------------------------------------------
def _mlp3_kernel(x_ref, w1_ref, b1_ref, w2_ref, b2_ref, w3_ref, b3_ref, o_ref):
    x = x_ref[...]
    h1 = jnp.dot(x, w1_ref[...], preferred_element_type=jnp.float32) + b1_ref[...]
    h1 = jnp.maximum(h1, 0.0)
    h2 = jnp.dot(h1.astype(w2_ref.dtype), w2_ref[...],
                 preferred_element_type=jnp.float32) + b2_ref[...]
    h2 = jnp.maximum(h2, 0.0)
    out = jnp.dot(h2.astype(w3_ref.dtype), w3_ref[...],
                  preferred_element_type=jnp.float32) + b3_ref[...]
    o_ref[...] = out.astype(o_ref.dtype)


def _mlp3_pallas(x, w1, b1, w2, b2, w3, b3, *, tm, cost):
    batch, in_dim = x.shape
    out_dim = w3.shape[1]
    grid = (pl.cdiv(batch, tm),)

    def resident(a):
        # Block index never changes across the grid -> fetched once, stays in VMEM.
        return pl.BlockSpec(a.shape, lambda i: (0, 0))

    return pl.pallas_call(
        _mlp3_kernel,
        out_shape=jax.ShapeDtypeStruct((batch, out_dim), jnp.float32),
        grid=grid,
        in_specs=[
            # streamed activations; last dim == full array dim (no lane padding)
            pl.BlockSpec((tm, in_dim), lambda i: (i, 0)),
            resident(w1), resident(b1),
            resident(w2), resident(b2),
            resident(w3), resident(b3),
        ],
        # unpadded output: (tm, n_Z) block, last dim == full array dim
        out_specs=pl.BlockSpec((tm, out_dim), lambda i: (i, 0)),
        compiler_params=pltpu.CompilerParams(
            dimension_semantics=("parallel",),   # shard batch across v7x's 2 TCs
        ),
        cost_estimate=cost,
    )(x, w1, b1, w2, b2, w3, b3)


# ----------------------------------------------------------------------------
# Parameter initialization (orthogonal_ like the PyTorch module: hidden layers
# gain 1.0, last layer gain 0.01, zero biases).  Only the hidden dim is padded
# to the 128-lane width; state_dim and n_Z stay unpadded.
# ----------------------------------------------------------------------------
def _orthogonal(key, out_dim, in_dim, gain):
    rows, cols = out_dim, in_dim
    flat = jax.random.normal(key, (rows, cols), dtype=jnp.float32)
    if rows < cols:
        flat = flat.T
    q, r = jnp.linalg.qr(flat)
    d = jnp.sign(jnp.diag(r))
    d = jnp.where(d == 0, 1.0, d)
    q = q * d[None, :]
    if rows < cols:
        q = q.T
    return gain * q  # shape [out, in]


def _pad2d(a, rows, cols):
    return jnp.pad(a, ((0, rows - a.shape[0]), (0, cols - a.shape[1])))


def make_team_discriminator_params(key, state_dim, hidden_size, n_Z):
    """MLP(input_dim=state_dim, hidden=hidden_size, output=n_Z, n_layers=2)."""
    k1, k2, k3 = jax.random.split(key, 3)
    w1 = _orthogonal(k1, hidden_size, state_dim, 1.0).T     # [state_dim, hidden]
    w2 = _orthogonal(k2, hidden_size, hidden_size, 1.0).T   # [hidden, hidden]
    w3 = _orthogonal(k3, n_Z, hidden_size, 0.01).T          # [hidden, n_Z]
    b1 = jnp.zeros((hidden_size,), jnp.float32)
    b2 = jnp.zeros((hidden_size,), jnp.float32)
    b3 = jnp.zeros((n_Z,), jnp.float32)

    hid_pad = _round_up(hidden_size, LANE)

    return {
        "state_dim": state_dim, "hidden_size": hidden_size, "n_Z": n_Z,
        "hid_pad": hid_pad,
        # hidden-dim-padded (zero-filled) weights, [in, out] layout
        "w1": _pad2d(w1, state_dim, hid_pad),     # [state_dim, hid_pad]
        "b1": _pad2d(b1[None, :], 1, hid_pad),    # [1, hid_pad]
        "w2": _pad2d(w2, hid_pad, hid_pad),       # [hid_pad, hid_pad]
        "b2": _pad2d(b2[None, :], 1, hid_pad),    # [1, hid_pad]
        "w3": _pad2d(w3, hid_pad, n_Z),           # [hid_pad, n_Z]
        "b3": b3[None, :],                        # [1, n_Z]
        # unpadded copies for the pure-JAX reference
        "raw": {"w1": w1, "b1": b1, "w2": w2, "b2": b2, "w3": w3, "b3": b3},
    }


# ----------------------------------------------------------------------------
# TeamDiscriminator.forward equivalent
# ----------------------------------------------------------------------------
def team_discriminator_forward(params, state, *, compute_dtype=jnp.float32):
    """
    state: [batch, state_dim] (any float/int dtype)
    returns: logits [batch, n_Z] in float32

    compute_dtype=jnp.bfloat16 halves input/weight HBM traffic on all TPU
    generations (incl. v5e); accumulation and the bias/ReLU epilogue stay f32.
    """
    x = jnp.asarray(state).astype(compute_dtype)
    batch, state_dim = x.shape
    assert state_dim == params["state_dim"]
    n_Z = params["n_Z"]
    hid_pad = params["hid_pad"]

    # Batch tile: full-dim block for tiny batches (always legal, grid=1);
    # otherwise aim for >= 2 grid steps so both v7x TensorCores get work,
    # capped at MAX_TM.  Multiple of 16 keeps bf16 sublane packing dense.
    if batch <= 32:
        tm = batch
    else:
        tm = min(MAX_TM, _round_up((batch + 1) // 2, 16))

    w1 = params["w1"].astype(compute_dtype)
    w2 = params["w2"].astype(compute_dtype)
    w3 = params["w3"].astype(compute_dtype)

    itemsize = jnp.dtype(compute_dtype).itemsize
    flops = 2 * batch * (state_dim * hid_pad + hid_pad * hid_pad + hid_pad * n_Z)
    bytes_accessed = (
        batch * state_dim * itemsize                              # input read
        + (w1.size + w2.size + w3.size) * itemsize                # weights
        + (params["b1"].size + params["b2"].size + params["b3"].size) * 4
        + batch * n_Z * 4                                         # output write
    )
    cost = pl.CostEstimate(flops=flops, transcendentals=0,
                           bytes_accessed=bytes_accessed)

    return _mlp3_pallas(x, w1, params["b1"], w2, params["b2"],
                        w3, params["b3"], tm=tm, cost=cost)


# ----------------------------------------------------------------------------
# Pure-JAX reference (unpadded weights)
# ----------------------------------------------------------------------------
def _reference_forward(params, state):
    raw = params["raw"]
    x = jnp.asarray(state).astype(jnp.float32)
    h1 = jnp.maximum(x @ raw["w1"] + raw["b1"], 0.0)
    h2 = jnp.maximum(h1 @ raw["w2"] + raw["b2"], 0.0)
    return h2 @ raw["w3"] + raw["b3"]


if __name__ == "__main__":
    # Small config consistent with the module: state_dim=16, hidden=32, n_Z=4
    state_dim, hidden_size, n_Z = 16, 32, 4
    batch = 2

    key = jax.random.PRNGKey(0)
    k_params, k_state = jax.random.split(key)

    params = make_team_discriminator_params(k_params, state_dim, hidden_size, n_Z)
    state = jax.random.normal(k_state, (batch, state_dim), dtype=jnp.float32)

    ref = _reference_forward(params, state)

    # f32 path (exact check)
    logits_f32 = jax.block_until_ready(
        team_discriminator_forward(params, state, compute_dtype=jnp.float32))
    assert logits_f32.shape == (batch, n_Z)
    assert jnp.allclose(logits_f32, ref, atol=1e-5, rtol=1e-5)

    # bf16 activations/weights, f32 accumulation (fast path on all generations)
    logits_bf16 = jax.block_until_ready(
        team_discriminator_forward(params, state, compute_dtype=jnp.bfloat16))
    assert logits_bf16.shape == (batch, n_Z)
    assert jnp.allclose(logits_bf16, ref, atol=2e-2, rtol=5e-2)

    print("KERNEL_OK")
</pallas_src>

<mosaic_0001>
module attributes {stable_mosaic.version = 11 : i64} {
  func.func @_mlp3_kernel(%arg0: i32, %arg1: memref<2x16xf32, #tpu.memory_space<vmem>>, %arg2: memref<16x128xf32, #tpu.memory_space<vmem>>, %arg3: memref<1x128xf32, #tpu.memory_space<vmem>>, %arg4: memref<128x128xf32, #tpu.memory_space<vmem>>, %arg5: memref<1x128xf32, #tpu.memory_space<vmem>>, %arg6: memref<128x4xf32, #tpu.memory_space<vmem>>, %arg7: memref<1x4xf32, #tpu.memory_space<vmem>>, %arg8: memref<2x4xf32, #tpu.memory_space<vmem>>) attributes {dimension_semantics = [#tpu.dimension_semantics<parallel>], iteration_bounds = array<i64: 1>, scalar_prefetch = 0 : i64, scratch_operands = 0 : i64, tpu.core_type = #tpu.core_type<tc>, window_params = [{transform_indices = @transform_0, window_bounds = array<i64: 2, 16>}, {pipeline_mode = #tpu.pipeline_mode<synchronous>, transform_indices = @transform_1, window_bounds = array<i64: 16, 128>}, {pipeline_mode = #tpu.pipeline_mode<synchronous>, transform_indices = @transform_2, window_bounds = array<i64: 1, 128>}, {pipeline_mode = #tpu.pipeline_mode<synchronous>, transform_indices = @transform_3, window_bounds = array<i64: 128, 128>}, {pipeline_mode = #tpu.pipeline_mode<synchronous>, transform_indices = @transform_4, window_bounds = array<i64: 1, 128>}, {pipeline_mode = #tpu.pipeline_mode<synchronous>, transform_indices = @transform_5, window_bounds = array<i64: 128, 4>}, {pipeline_mode = #tpu.pipeline_mode<synchronous>, transform_indices = @transform_6, window_bounds = array<i64: 1, 4>}, {transform_indices = @transform_7, window_bounds = array<i64: 2, 4>}]} {
    %c0 = arith.constant 0 : index
    %c0_0 = arith.constant 0 : index
    %0 = vector.load %arg1[%c0, %c0_0] : memref<2x16xf32, #tpu.memory_space<vmem>>, vector<2x16xf32>
    %c0_1 = arith.constant 0 : index
    %c0_2 = arith.constant 0 : index
    %1 = vector.load %arg2[%c0_1, %c0_2] : memref<16x128xf32, #tpu.memory_space<vmem>>, vector<16x128xf32>
    %cst = arith.constant dense<0.000000e+00> : vector<2x128xf32>
    %2 = tpu.matmul %0, %1, %cst {dimension_numbers = #tpu.dot_dimension_numbers<[1], [0], [0], [1], [0, 0, 1, 1], [], []>} : vector<2x16xf32>, vector<16x128xf32>, vector<2x128xf32> -> vector<2x128xf32>
    %c0_3 = arith.constant 0 : index
    %c0_4 = arith.constant 0 : index
    %3 = vector.load %arg3[%c0_3, %c0_4] : memref<1x128xf32, #tpu.memory_space<vmem>>, vector<1x128xf32>
    %4 = vector.broadcast %3 : vector<1x128xf32> to vector<2x128xf32>
    %5 = arith.addf %2, %4 : vector<2x128xf32>
    %cst_5 = arith.constant 0.000000e+00 : f32
    %6 = vector.broadcast %cst_5 : f32 to vector<2x128xf32>
    %7 = arith.maximumf %5, %6 : vector<2x128xf32>
    %c0_6 = arith.constant 0 : index
    %c0_7 = arith.constant 0 : index
    %8 = vector.load %arg4[%c0_6, %c0_7] : memref<128x128xf32, #tpu.memory_space<vmem>>, vector<128x128xf32>
    %cst_8 = arith.constant dense<0.000000e+00> : vector<2x128xf32>
    %9 = tpu.matmul %7, %8, %cst_8 {dimension_numbers = #tpu.dot_dimension_numbers<[1], [0], [0], [1], [0, 0, 1, 1], [], []>} : vector<2x128xf32>, vector<128x128xf32>, vector<2x128xf32> -> vector<2x128xf32>
    %c0_9 = arith.constant 0 : index
    %c0_10 = arith.constant 0 : index
    %10 = vector.load %arg5[%c0_9, %c0_10] : memref<1x128xf32, #tpu.memory_space<vmem>>, vector<1x128xf32>
    %11 = vector.broadcast %10 : vector<1x128xf32> to vector<2x128xf32>
    %12 = arith.addf %9, %11 : vector<2x128xf32>
    %cst_11 = arith.constant 0.000000e+00 : f32
    %13 = vector.broadcast %cst_11 : f32 to vector<2x128xf32>
    %14 = arith.maximumf %12, %13 : vector<2x128xf32>
    %c0_12 = arith.constant 0 : index
    %c0_13 = arith.constant 0 : index
    %15 = vector.load %arg6[%c0_12, %c0_13] : memref<128x4xf32, #tpu.memory_space<vmem>>, vector<128x4xf32>
    %cst_14 = arith.constant dense<0.000000e+00> : vector<2x4xf32>
    %16 = tpu.matmul %14, %15, %cst_14 {dimension_numbers = #tpu.dot_dimension_numbers<[1], [0], [0], [1], [0, 0, 1, 1], [], []>} : vector<2x128xf32>, vector<128x4xf32>, vector<2x4xf32> -> vector<2x4xf32>
    %c0_15 = arith.constant 0 : index
    %c0_16 = arith.constant 0 : index
    %17 = vector.load %arg7[%c0_15, %c0_16] : memref<1x4xf32, #tpu.memory_space<vmem>>, vector<1x4xf32>
    %18 = vector.broadcast %17 : vector<1x4xf32> to vector<2x4xf32>
    %19 = arith.addf %16, %18 : vector<2x4xf32>
    %c0_17 = arith.constant 0 : index
    %c0_18 = arith.constant 0 : index
    %20 = vector.load %arg8[%c0_17, %c0_18] : memref<2x4xf32, #tpu.memory_space<vmem>>, vector<2x4xf32>
    tpu.vector_store %arg8[%c0_17, %c0_18], %19 {strides = array<i32>} : memref<2x4xf32, #tpu.memory_space<vmem>>, vector<2x4xf32>,
    return
  }
  func.func @transform_0(%arg0: i32) -> (i32, i32) {
    %c0_i32 = arith.constant 0 : i32
    %c0_i32_0 = arith.constant 0 : i32
    return %arg0, %c0_i32 : i32, i32
  }
  func.func @transform_1(%arg0: i32) -> (i32, i32) {
    %c0_i32 = arith.constant 0 : i32
    %c0_i32_0 = arith.constant 0 : i32
    %c0_i32_1 = arith.constant 0 : i32
    return %c0_i32, %c0_i32_0 : i32, i32
  }
  func.func @transform_2(%arg0: i32) -> (i32, i32) {
    %c0_i32 = arith.constant 0 : i32
    %c0_i32_0 = arith.constant 0 : i32
    %c0_i32_1 = arith.constant 0 : i32
    return %c0_i32, %c0_i32_0 : i32, i32
  }
  func.func @transform_3(%arg0: i32) -> (i32, i32) {
    %c0_i32 = arith.constant 0 : i32
    %c0_i32_0 = arith.constant 0 : i32
    %c0_i32_1 = arith.constant 0 : i32
    return %c0_i32, %c0_i32_0 : i32, i32
  }
  func.func @transform_4(%arg0: i32) -> (i32, i32) {
    %c0_i32 = arith.constant 0 : i32
    %c0_i32_0 = arith.constant 0 : i32
    %c0_i32_1 = arith.constant 0 : i32
    return %c0_i32, %c0_i32_0 : i32, i32
  }
  func.func @transform_5(%arg0: i32) -> (i32, i32) {
    %c0_i32 = arith.constant 0 : i32
    %c0_i32_0 = arith.constant 0 : i32
    %c0_i32_1 = arith.constant 0 : i32
    return %c0_i32, %c0_i32_0 : i32, i32
  }
  func.func @transform_6(%arg0: i32) -> (i32, i32) {
    %c0_i32 = arith.constant 0 : i32
    %c0_i32_0 = arith.constant 0 : i32
    %c0_i32_1 = arith.constant 0 : i32
    return %c0_i32, %c0_i32_0 : i32, i32
  }
  func.func @transform_7(%arg0: i32) -> (i32, i32) {
    %c0_i32 = arith.constant 0 : i32
    %c0_i32_0 = arith.constant 0 : i32
    return %arg0, %c0_i32 : i32, i32
  }
}

</mosaic_0001>

<bundles_post_ra>
// kernel: tpu_custom_call.1
= control target key start
LH: loop header
LB: loop body
LE: loop exit
PB: predicated region body
PF: predicated region fallthrough
CT: control target
= control target key end

     0   :  { %12 = vsyncpa [#allocation3], 0  ;;  %s753_s0 = inlined_call_operand.vmem [shape: f32[2,16], index: 0, kind: input, shape index: {}]   ;;  %s754_s1 = inlined_call_operand.hbm [shape: f32[16,128], index: 1, kind: input, shape index: {}]   ;;  %s755_s2 = inlined_call_operand.vmem [shape: f32[1,128], index: 2, kind: input, shape index: {}]   ;;  %s756_s3 = inlined_call_operand.vmem [shape: f32[128,128], index: 3, kind: input, shape index: {}]   ;;  %s757_s4 = inlined_call_operand.vmem [shape: f32[1,128], index: 4, kind: input, shape index: {}]   ;;  %s758_s5 = inlined_call_operand.vmem [shape: f32[128,4], index: 5, kind: input, shape index: {}]   ;;  %s759_s6 = inlined_call_operand.vmem [shape: f32[1,4], index: 6, kind: input, shape index: {}]   ;;  %s760_s7 = inlined_call_operand.hbm [shape: f32[2,4], index: 7, kind: output, shape index: {}]  }
   0x1   :  { %13 = vsyncpa [#allocation4], 0  ;;  %s554_s24 = smov [#allocation2]   ;;  %s506_s28 = scalar_lea.hbm %s754_s1, 256 }
   0x2   :  { %s21_s25 = sshll.u32 %s554_s24, 4  ;;  %p507_p0 = scmp.ne.s32.totalorder %s754_s1, %s506_s28  ;;  %s22_s25 = int_to_ptr.vmem [resolvable:$true] %s21_s25 }
   0x3   :  { %p510_p1 = scmp.lt.u32.totalorder %s506_s28, %s754_s1 }
   0x5   :  { %p512_p2 = pnand %p510_p1, %p507_p0 }
   0x7   :  { %515 = shalt.err (!%p512_p2)
}
   0x8   :  { %s516_s10 = scalar_lea.vmem %s22_s25, 256  ;;  %p521_p4 = scmp.lt.s32.totalorder %s22_s25, %s22_s25 }
   0x9   :  { %p517_p3 = scmp.ne.s32.totalorder %s22_s25, %s516_s10  ;;  %p522_p5 = scmp.lt.s32.totalorder %s516_s10, %s516_s10 }
   0xb   :  { %p523_p6 = por %p522_p5, %p521_p4 }
   0xd   :  { %p524_p7 = pnand %p523_p6, %p517_p3 }
   0xf   :  { %527 = shalt.err (!%p524_p7)
}
  0x10   :  { %s555_s11 = smov 128   ;;  %s556_s12 = smov 8  }
  0x11   :  { %27 = dma.hbm_to_vmem [thread:$0]  %s754_s1, 256, %s22_s25, [#allocation3], %s555_s11, %s555_s11, %s556_s12  }
  0x12   :  { %550 = dma.done.wait [#allocation3], 256  }
  0x13   :  { %551 = vsyncadd [#allocation3], 4294967040  ;;  %v557_v0 = vmov 0.0|0.0   ;;  %vm558_vm0 = vmmov 0   ;;  %v559_v1 = vmov 0.0   ;;  %v42_v2 = vld [vmem:[#allocation2] sm:$0xff] }
  0x14   :  { %448 = vmatprep.subr.bf16.mxu0 %v557_v0  ;;  %375 = vmatprep.mubr.msk.f32.mxu0 %vm558_vm0, %v559_v1  ;;  %v43_v3 = vld [vmem:[#allocation2 + $0x8] sm:$0xff]  ;;  %v126_v5 = vld [vmem:[%s756_s3] sm:$0xff]  ;;  %v128_v7 = vld [vmem:[%s756_s3 + $0x10] sm:$0xff]  ;;  %vm51_vm1 = vcmask 130048   ;;  %s560_s9 = smov [#allocation5]   ;;  %vm313_vm2 = vcmask 25600  }
  0x15   :  { %451 = vmatprep.subr.bf16.mxu1 %v557_v0  ;;  %410 = vmatprep.mubr.msk.f32.mxu1 %vm558_vm0, %v559_v1  ;;  %v449_v4 = vpack.c.bf16 %v43_v3, %v42_v2  ;;  %v127_v6 = vld [vmem:[%s756_s3 + $0x8] sm:$0xff]  ;;  %v129_v9 = vld [vmem:[%s756_s3 + $0x18] sm:$0xff]  ;;  %v41_v10 = vld [vmem:[%s753_s0] sm:$0x3]  ;;  %s321_s10 = sshll.u32 %s560_s9, 4  ;;  %s322_s10 = int_to_ptr.vmem [resolvable:$true] %s321_s10 }
  0x16   :  { %v452_v8 = vpack.c.bf16 %v127_v6, %v126_v5  ;;  %v455_v11 = vpack.c.bf16 %v129_v9, %v128_v7  ;;  %v130_v12 = vld [vmem:[%s756_s3 + $0x20] sm:$0xff]  ;;  %v131_v13 = vld [vmem:[%s756_s3 + $0x28] sm:$0xff]  ;;  %v132_v15 = vld [vmem:[%s756_s3 + $0x30] sm:$0xff]  ;;  %p533_p9 = scmp.lt.s32.totalorder %s322_s10, %s322_s10 }
  0x17   :  { %450 = vmatpush3.bf16.msra.mxu0 %v449_v4  ;;  %v458_v14 = vpack.c.bf16 %v131_v13, %v130_v12  ;;  %v133_v16 = vld [vmem:[%s756_s3 + $0x38] sm:$0xff]  ;;  %v134_v18 = vld [vmem:[%s756_s3 + $0x40] sm:$0xff]  ;;  %v135_v19 = vld [vmem:[%s756_s3 + $0x48] sm:$0xff] }
  0x18   :  { %453 = vmatpush3.bf16.msra.mxu1 %v452_v8  ;;  %475 = vmatprep.subr.bf16.mxu0 %v557_v0  ;;  %v461_v17 = vpack.c.bf16 %v133_v16, %v132_v15  ;;  %v464_v20 = vpack.c.bf16 %v135_v19, %v134_v18  ;;  %v136_v21 = vld [vmem:[%s756_s3 + $0x50] sm:$0xff]  ;;  %v137_v22 = vld [vmem:[%s756_s3 + $0x58] sm:$0xff]  ;;  %v138_v24 = vld [vmem:[%s756_s3 + $0x60] sm:$0xff] }
  0x19   :  { %454 = vmatprep.subr.bf16.mxu1 %v557_v0  ;;  %v467_v23 = vpack.c.bf16 %v137_v22, %v136_v21  ;;  %v139_v25 = vld [vmem:[%s756_s3 + $0x68] sm:$0xff]  ;;  %v140_v27 = vld [vmem:[%s756_s3 + $0x70] sm:$0xff]  ;;  %v141_v28 = vld [vmem:[%s756_s3 + $0x78] sm:$0xff] }
  0x1a   :  { %376 = vmatmul.mubr.msk.f32.vlgmr.msra.gmra.mrb[0].mxu0 %vm51_vm1, %v41_v10  ;;  %v470_v26 = vpack.c.bf16 %v139_v25, %v138_v24  ;;  %v473_v29 = vpack.c.bf16 %v141_v28, %v140_v27  ;;  %v220_v30 = vld [vmem:[%s758_s5] sm:$0xff]  ;;  %v221_v31 = vld [vmem:[%s758_s5 + $0x8] sm:$0xff]  ;;  %v222_v32 = vld [vmem:[%s758_s5 + $0x10] sm:$0xff] }
  0x1b   :  { %445 = vmatprep.mubr.msk.f32.mxu0 %vm558_vm0, %v559_v1  ;;  %v476_v33 = vpack.c.bf16 %v221_v31, %v220_v30  ;;  %v223_v34 = vld [vmem:[%s758_s5 + $0x18] sm:$0xff]  ;;  %v224_v36 = vld [vmem:[%s758_s5 + $0x20] sm:$0xff]  ;;  %v225_v37 = vld [vmem:[%s758_s5 + $0x28] sm:$0xff] }
  0x1c   :  { %456 = vmatpush3.bf16.msra.mxu1 %v455_v11  ;;  %v479_v35 = vpack.c.bf16 %v223_v34, %v222_v32  ;;  %v482_v38 = vpack.c.bf16 %v225_v37, %v224_v36  ;;  %v226_v39 = vld [vmem:[%s758_s5 + $0x30] sm:$0xff]  ;;  %v227_v40 = vld [vmem:[%s758_s5 + $0x38] sm:$0xff]  ;;  %v228_v42 = vld [vmem:[%s758_s5 + $0x40] sm:$0xff] }
  0x1d   :  { %457 = vmatprep.subr.bf16.mxu1 %v557_v0  ;;  %477 = vmatpush3.bf16.msra.mxu0 %v476_v33  ;;  %v485_v41 = vpack.c.bf16 %v227_v40, %v226_v39  ;;  %v229_v43 = vld [vmem:[%s758_s5 + $0x48] sm:$0xff]  ;;  %v230_v45 = vld [vmem:[%s758_s5 + $0x50] sm:$0xff]  ;;  %v231_v46 = vld [vmem:[%s758_s5 + $0x58] sm:$0xff] }
  0x1e   :  { %478 = vmatprep.subr.bf16.mxu0 %v557_v0  ;;  %v488_v44 = vpack.c.bf16 %v229_v43, %v228_v42  ;;  %v491_v47 = vpack.c.bf16 %v231_v46, %v230_v45  ;;  %v232_v48 = vld [vmem:[%s758_s5 + $0x60] sm:$0xff]  ;;  %v233_v49 = vld [vmem:[%s758_s5 + $0x68] sm:$0xff]  ;;  %v234_v56 = vld [vmem:[%s758_s5 + $0x70] sm:$0xff] }
  0x1f   :  { %v494_v50 = vpack.c.bf16 %v233_v49, %v232_v48  ;;  %v330_v51 = vld [vmem:[%s755_s2] ss:$0 sm:$0xff]  ;;  %v235_v57 = vld [vmem:[%s758_s5 + $0x78] sm:$0xff]  ;;  %s528_s5 = scalar_lea.vmem %s322_s10, 32 }
  0x20   :  { %459 = vmatpush3.bf16.msra.mxu1 %v458_v14  ;;  %v497_v58 = vpack.c.bf16 %v235_v57, %v234_v56  ;;  %v332_v59 = vld [vmem:[%s757_s4] ss:$0 sm:$0xff]  ;;  %p529_p8 = scmp.ne.s32.totalorder %s322_s10, %s528_s5  ;;  %p534_p10 = scmp.lt.s32.totalorder %s528_s5, %s528_s5 }
  0x21   :  { %460 = vmatprep.subr.bf16.mxu1 %v557_v0  ;;  %480 = vmatpush3.bf16.msra.mxu0 %v479_v35 }
  0x22   :  { %481 = vmatprep.subr.bf16.mxu0 %v557_v0  ;;  %p535_p11 = por %p534_p10, %p533_p9 }
  0x24   :  { %462 = vmatpush3.bf16.msra.mxu1 %v461_v17  ;;  %p536_p12 = pnand %p535_p11, %p529_p8 }
  0x25   :  { %463 = vmatprep.subr.bf16.mxu1 %v557_v0  ;;  %483 = vmatpush3.bf16.msra.mxu0 %v482_v38 }
  0x26   :  { %484 = vmatprep.subr.bf16.mxu0 %v557_v0 }
  0x28   :  { %465 = vmatpush3.bf16.msra.mxu1 %v464_v20 }
  0x29   :  { %466 = vmatprep.subr.bf16.mxu1 %v557_v0  ;;  %486 = vmatpush3.bf16.msra.mxu0 %v485_v41 }
  0x2a   :  { %487 = vmatprep.subr.bf16.mxu0 %v557_v0 }
  0x2c   :  { %468 = vmatpush3.bf16.msra.mxu1 %v467_v23 }
  0x2d   :  { %469 = vmatprep.subr.bf16.mxu1 %v557_v0  ;;  %489 = vmatpush3.bf16.msra.mxu0 %v488_v44 }
  0x2e   :  { %490 = vmatprep.subr.bf16.mxu0 %v557_v0 }
  0x30   :  { %471 = vmatpush3.bf16.msra.mxu1 %v470_v26 }
  0x31   :  { %472 = vmatprep.subr.bf16.mxu1 %v557_v0  ;;  %492 = vmatpush3.bf16.msra.mxu0 %v491_v47 }
  0x32   :  { %493 = vmatprep.subr.bf16.mxu0 %v557_v0 }
  0x34   :  { %474 = vmatpush3.bf16.msra.mxu1 %v473_v29 }
  0x35   :  { %495 = vmatpush3.bf16.msra.mxu0 %v494_v50 }
  0x36   :  { %496 = vmatprep.subr.bf16.mxu0 %v557_v0  ;;  %v333_v0 = vld [vmem:[%s759_s6] ss:$0 sm:$0xff] }
  0x39   :  { %498 = vmatpush3.bf16.msra.mxu0 %v497_v58 }
  0xed   :  { %v121_v52 = vpop.f32.mrb[0].mxu0 }
  0xee   :  { %v122_v53 = vadd.f32 %v330_v51, %v121_v52  ;;  %v377_v54 = vpop.f32.mrb[1].mxu0 }
  0xf0   :  { %v125_v55 = vmax.f32 %v122_v53, 0.0 }
  0xf2   :  { %411 = vmatmul.mubr.f32.vlgmr.msra.gmra.mrb[0].mxu1 %v125_v55 }
 0x1c5   :  { %v215_v60 = vpop.f32.mrb[0].mxu1 }
 0x1c6   :  { %v216_v61 = vadd.f32 %v332_v59, %v215_v60  ;;  %v412_v62 = vpop.f32.mrb[1].mxu1 }
 0x1c8   :  { %v219_v63 = vmax.f32 %v216_v61, 0.0 }
 0x1ca   :  { %446 = vmatmul.mubr.f32.vlgmr.msra.gmra.mrb[2].mxu0 %v219_v63 }
 0x29d   :  { %v309_v1 = vpop.f32.mrb[2].mxu0 }
 0x29e   :  { %v310_v2 = vadd.f32 %v333_v0, %v309_v1  ;;  %v447_v3 = vpop.f32.mrb[3].mxu0 }
 0x2a0   :  { %314 = vst.msk [vmem:[#allocation5] sm:$0x3] %vm313_vm2, %v310_v2 }
 0x2a1   :  { %539 = shalt.err (!%p536_p12)
}
 0x2a2   :  { %s540_s12 = scalar_lea.hbm %s760_s7, 32 }
 0x2a3   :  { %p541_p13 = scmp.ne.s32.totalorder %s760_s7, %s540_s12  ;;  %p544_p0 = scmp.lt.u32.totalorder %s540_s12, %s760_s7 }
 0x2a5   :  { %p546_p1 = pnand %p544_p0, %p541_p13 }
 0x2a7   :  { %549 = shalt.err (!%p546_p1)
}
 0x2a8   :  { %324 = dma.vmem_to_hbm [thread:$0]  %s322_s10, 32, %s760_s7, [#allocation4]  }
 0x2a9   :  { %552 = dma.done.wait [#allocation4], 32  }
 0x2aa   :  { %553 = vsyncadd [#allocation4], 4294967264 }
 0x2ab   :  { %328 = vsyncpa [#allocation3], 1 }
 0x2ac   :  { %329 = vsyncpa [#allocation4], 1 }

</bundles_post_ra>
